<compile_context>
chip_gen: v7x
topology: tpu7x:2x2x1
jax: 0.10.0
libtpu: 0.0.40
codegen_flags: <defaults>
</compile_context>

<pallas_src>
import functools

import jax
import jax.numpy as jnp
from jax.experimental import pallas as pl
from jax.experimental.pallas import tpu as pltpu


def _round_up(x, m):
    return ((x + m - 1) // m) * m


def _cdiv(a, b):
    return -(-a // b)


def _nbytes(a):
    return int(a.size) * jnp.dtype(a.dtype).itemsize


# ---------------------------------------------------------------------------
# Kernel
# ---------------------------------------------------------------------------
def _policy_kernel(obs_ref, goal_ref, nobs_ref, ngoal_ref,
                   w1o_ref, w1g_ref, b1_ref,
                   w2_ref, b2_ref,
                   w3_ref, b3_ref,
                   out_ref,
                   *, clip_obs, max_u):
    # --- fused RunningMeanStd normalize + clamp (VPU, f32) ---
    # norm rows: [0] = 1/std (scale), [1] = -mean/std (shift)
    obs = jnp.clip(obs_ref[...] * nobs_ref[0:1, :] + nobs_ref[1:2, :],
                   -clip_obs, clip_obs)
    goal = jnp.clip(goal_ref[...] * ngoal_ref[0:1, :] + ngoal_ref[1:2, :],
                    -clip_obs, clip_obs)

    # --- layer 1: split-W1 two-dot (== concat([obs, goal]) @ W1), f32 MXU ---
    h = (jnp.dot(obs, w1o_ref[...], preferred_element_type=jnp.float32)
         + jnp.dot(goal, w1g_ref[...], preferred_element_type=jnp.float32)
         + b1_ref[...])
    h = jnp.maximum(h, 0.0)                          # ReLU

    # --- layer 2 ---
    h = jnp.dot(h, w2_ref[...], preferred_element_type=jnp.float32) + b2_ref[...]
    h = jnp.maximum(h, 0.0)                          # ReLU

    # --- output layer ---
    a = jnp.dot(h, w3_ref[...], preferred_element_type=jnp.float32) + b3_ref[...]

    # --- action clamp (noise term is zero since noise_eps == 0.0) ---
    out_ref[...] = jnp.clip(a, -max_u, max_u).astype(out_ref.dtype)


# ---------------------------------------------------------------------------
# Parameter preparation (done once, outside the hot path)
# ---------------------------------------------------------------------------
def prepare_inference_params(params):
    """Fuses normalization stats, splits W1, zero-pads the hidden dim to 128."""
    obs_dim = params["obs_mean"].shape[1]
    hid = params["w1"].shape[1]
    hid_pad = _round_up(hid, 128)
    hp = hid_pad - hid

    # Fused normalization: x_n = x * (1/std) + (-mean/std); std already clamped.
    obs_scale = 1.0 / params["obs_std"]
    goal_scale = 1.0 / params["goal_std"]
    norm_obs = jnp.concatenate(
        [obs_scale, -params["obs_mean"] * obs_scale], axis=0).astype(jnp.float32)
    norm_goal = jnp.concatenate(
        [goal_scale, -params["goal_mean"] * goal_scale], axis=0).astype(jnp.float32)

    w1 = params["w1"].astype(jnp.float32)
    # Split W1 so obs/goal can be fed as separate inputs (no wrapper concat),
    # and zero-pad the hidden (lane) dim to 128.  Zero-padded hidden units stay
    # exactly zero through bias/ReLU/W2, so outputs are unchanged.
    w1o = jnp.pad(w1[:obs_dim], ((0, 0), (0, hp)))
    w1g = jnp.pad(w1[obs_dim:], ((0, 0), (0, hp)))
    b1 = jnp.pad(params["b1"].astype(jnp.float32), ((0, 0), (0, hp)))
    w2 = jnp.pad(params["w2"].astype(jnp.float32), ((0, hp), (0, hp)))
    b2 = jnp.pad(params["b2"].astype(jnp.float32), ((0, 0), (0, hp)))
    w3 = jnp.pad(params["w3"].astype(jnp.float32), ((0, hp), (0, 0)))
    b3 = params["b3"].astype(jnp.float32)

    return {
        "norm_obs": norm_obs, "norm_goal": norm_goal,
        "w1o": w1o, "w1g": w1g, "b1": b1,
        "w2": w2, "b2": b2,
        "w3": w3, "b3": b3,
    }


# ---------------------------------------------------------------------------
# Forward wrapper
# ---------------------------------------------------------------------------
def deterministic_mlp_policy_forward(observation, desired_goal, prep,
                                     *, clip_obs=200.0, max_u=1.0,
                                     noise_eps=0.0, block_m=2048):
    """Full policy forward pass as one batch-tiled Pallas TPU kernel.

    Note for v7x: at very large batch the grid naturally becomes >= 2 and the
    "parallel" batch axis shards across both TensorCores; lower block_m if you
    want >= 2 tiles at smaller batches.  On v5e/v6e (single TC) grid=1 is ideal.
    """
    # TODO(synk): noise_eps > 0 requires an in-kernel PRNG path.
    assert noise_eps == 0.0, "kernel only implements the noise_eps == 0.0 path"

    obs = observation.astype(jnp.float32)
    goal = desired_goal.astype(jnp.float32)
    batch, obs_dim = obs.shape
    goal_dim = goal.shape[1]
    hid_pad = prep["w2"].shape[0]
    out_dim = prep["w3"].shape[1]

    # Batch tiling: pick the number of tiles implied by block_m, then size the
    # tile to minimize tail padding (multiple of 8 sublanes).
    bm_cap = min(block_m, _round_up(batch, 8))
    num_tiles = _cdiv(batch, bm_cap)
    bm = _round_up(_cdiv(batch, num_tiles), 8)
    padded = bm * num_tiles
    if padded != batch:
        obs = jnp.pad(obs, ((0, padded - batch), (0, 0)))
        goal = jnp.pad(goal, ((0, padded - batch), (0, 0)))
    grid = (num_tiles,)

    weight_keys = ("norm_obs", "norm_goal", "w1o", "w1g", "b1", "w2", "b2",
                   "w3", "b3")
    flops = 2 * padded * ((obs_dim + goal_dim) * hid_pad
                          + hid_pad * hid_pad + hid_pad * out_dim)
    bytes_accessed = (_nbytes(obs) + _nbytes(goal)
                      + sum(_nbytes(prep[k]) for k in weight_keys)
                      + padded * out_dim * 4)
    cost = pl.CostEstimate(flops=flops, transcendentals=0,
                           bytes_accessed=int(bytes_accessed))

    kernel = functools.partial(_policy_kernel, clip_obs=clip_obs, max_u=max_u)

    out = pl.pallas_call(
        kernel,
        out_shape=jax.ShapeDtypeStruct((padded, out_dim), jnp.float32),
        grid_spec=pltpu.PrefetchScalarGridSpec(
            num_scalar_prefetch=0,
            grid=grid,
            in_specs=[
                # batch-tiled activations (obs / goal kept separate: no
                # wrapper-side concat/pad materialization of x)
                pl.BlockSpec((bm, obs_dim), lambda i: (i, 0)),
                pl.BlockSpec((bm, goal_dim), lambda i: (i, 0)),
                # norm stats / weights / biases: constant block index ->
                # fetched once, VMEM-resident across the whole batch pipeline
                pl.BlockSpec((2, obs_dim), lambda i: (0, 0)),
                pl.BlockSpec((2, goal_dim), lambda i: (0, 0)),
                pl.BlockSpec((obs_dim, hid_pad), lambda i: (0, 0)),
                pl.BlockSpec((goal_dim, hid_pad), lambda i: (0, 0)),
                pl.BlockSpec((1, hid_pad), lambda i: (0, 0)),
                pl.BlockSpec((hid_pad, hid_pad), lambda i: (0, 0)),
                pl.BlockSpec((1, hid_pad), lambda i: (0, 0)),
                pl.BlockSpec((hid_pad, out_dim), lambda i: (0, 0)),
                pl.BlockSpec((1, out_dim), lambda i: (0, 0)),
            ],
            # Unpadded output block (last dim == full array dim): 32x less HBM
            # writeback than the old 128-lane zero-padded slab.
            out_specs=pl.BlockSpec((bm, out_dim), lambda i: (i, 0)),
        ),
        compiler_params=pltpu.CompilerParams(
            dimension_semantics=("parallel",)),      # shards grid over v7x TCs
        cost_estimate=cost,
    )(obs, goal,
      prep["norm_obs"], prep["norm_goal"],
      prep["w1o"], prep["w1g"], prep["b1"],
      prep["w2"], prep["b2"],
      prep["w3"], prep["b3"])

    return out[:batch]


# ---------------------------------------------------------------------------
# Synthetic init + pure-JAX reference
# ---------------------------------------------------------------------------
def init_params(key, observation_size, goal_size, output_size, hidden_size):
    """Deterministic synthetic parameter init (num_layers = 2)."""
    ks = jax.random.split(key, 8)
    input_size = observation_size + goal_size

    def lin(k, fan_in, fan_out):
        # torch.nn.Linear default init: U(-1/sqrt(fan_in), 1/sqrt(fan_in))
        bound = 1.0 / jnp.sqrt(fan_in)
        kw, kb = jax.random.split(k)
        w = jax.random.uniform(kw, (fan_in, fan_out), jnp.float32, -bound, bound)
        b = jax.random.uniform(kb, (1, fan_out), jnp.float32, -bound, bound)
        return w, b

    w1, b1 = lin(ks[0], input_size, hidden_size)
    w2, b2 = lin(ks[1], hidden_size, hidden_size)
    w3, b3 = lin(ks[2], hidden_size, output_size)

    clip_std = 0.01 ** 2
    obs_mean = jax.random.normal(ks[3], (1, observation_size), jnp.float32) * 0.1
    goal_mean = jax.random.normal(ks[4], (1, goal_size), jnp.float32) * 0.1
    obs_std = jnp.maximum(
        jnp.abs(jax.random.normal(ks[5], (1, observation_size), jnp.float32)) + 0.5,
        clip_std)
    goal_std = jnp.maximum(
        jnp.abs(jax.random.normal(ks[6], (1, goal_size), jnp.float32)) + 0.5,
        clip_std)

    return {
        "w1": w1, "b1": b1,
        "w2": w2, "b2": b2,
        "w3": w3, "b3": b3,
        "obs_mean": obs_mean, "obs_std": obs_std,
        "goal_mean": goal_mean, "goal_std": goal_std,
    }


def reference_forward(observation, desired_goal, params,
                      *, clip_obs=200.0, max_u=1.0):
    """Pure-JAX reference of the same forward pass (for correctness check)."""
    obs = jnp.clip((observation - params["obs_mean"]) / params["obs_std"],
                   -clip_obs, clip_obs)
    goal = jnp.clip((desired_goal - params["goal_mean"]) / params["goal_std"],
                    -clip_obs, clip_obs)
    x = jnp.concatenate([obs, goal], axis=1)
    h = jnp.maximum(x @ params["w1"] + params["b1"], 0.0)
    h = jnp.maximum(h @ params["w2"] + params["b2"], 0.0)
    a = h @ params["w3"] + params["b3"]
    return jnp.clip(a, -max_u, max_u)


if __name__ == "__main__":
    # Small shapes consistent with the module's constructor.
    observation_size = 16
    goal_size = 8
    output_size = 4
    hidden_size = 32
    batch = 8

    key = jax.random.PRNGKey(0)
    k_params, k_obs, k_goal, k_obs2, k_goal2 = jax.random.split(key, 5)

    params = init_params(k_params, observation_size, goal_size,
                         output_size, hidden_size)
    prep = prepare_inference_params(params)

    # Case 1: single-tile grid (whole batch in one step).
    observation = jax.random.normal(k_obs, (batch, observation_size), jnp.float32)
    desired_goal = jax.random.normal(k_goal, (batch, goal_size), jnp.float32)
    ref = reference_forward(observation, desired_goal, params)
    action = deterministic_mlp_policy_forward(observation, desired_goal, prep)
    action = jax.block_until_ready(action)
    assert action.shape == (batch, output_size)
    assert jnp.allclose(action, ref, atol=1e-4, rtol=1e-4), "mismatch vs reference"

    # Case 2: multi-tile grid with an awkward batch (exercises tail padding).
    batch2 = 20
    observation2 = jax.random.normal(k_obs2, (batch2, observation_size), jnp.float32)
    desired_goal2 = jax.random.normal(k_goal2, (batch2, goal_size), jnp.float32)
    ref2 = reference_forward(observation2, desired_goal2, params)
    action2 = deterministic_mlp_policy_forward(observation2, desired_goal2, prep,
                                               block_m=8)
    action2 = jax.block_until_ready(action2)
    assert action2.shape == (batch2, output_size)
    assert jnp.allclose(action2, ref2, atol=1e-4, rtol=1e-4), "tiled mismatch vs reference"

    print("KERNEL_OK")
</pallas_src>

<mosaic_0001>
module attributes {stable_mosaic.version = 11 : i64} {
  func.func @_policy_kernel(%arg0: i32, %arg1: memref<8x16xf32, #tpu.memory_space<vmem>>, %arg2: memref<8x8xf32, #tpu.memory_space<vmem>>, %arg3: memref<2x16xf32, #tpu.memory_space<vmem>>, %arg4: memref<2x8xf32, #tpu.memory_space<vmem>>, %arg5: memref<16x128xf32, #tpu.memory_space<vmem>>, %arg6: memref<8x128xf32, #tpu.memory_space<vmem>>, %arg7: memref<1x128xf32, #tpu.memory_space<vmem>>, %arg8: memref<128x128xf32, #tpu.memory_space<vmem>>, %arg9: memref<1x128xf32, #tpu.memory_space<vmem>>, %arg10: memref<128x4xf32, #tpu.memory_space<vmem>>, %arg11: memref<1x4xf32, #tpu.memory_space<vmem>>, %arg12: memref<8x4xf32, #tpu.memory_space<vmem>>) attributes {dimension_semantics = [#tpu.dimension_semantics<parallel>], iteration_bounds = array<i64: 1>, scalar_prefetch = 0 : i64, scratch_operands = 0 : i64, tpu.core_type = #tpu.core_type<tc>, window_params = [{transform_indices = @transform_0, window_bounds = array<i64: 8, 16>}, {transform_indices = @transform_1, window_bounds = array<i64: 8, 8>}, {pipeline_mode = #tpu.pipeline_mode<synchronous>, transform_indices = @transform_2, window_bounds = array<i64: 2, 16>}, {pipeline_mode = #tpu.pipeline_mode<synchronous>, transform_indices = @transform_3, window_bounds = array<i64: 2, 8>}, {pipeline_mode = #tpu.pipeline_mode<synchronous>, transform_indices = @transform_4, window_bounds = array<i64: 16, 128>}, {pipeline_mode = #tpu.pipeline_mode<synchronous>, transform_indices = @transform_5, window_bounds = array<i64: 8, 128>}, {pipeline_mode = #tpu.pipeline_mode<synchronous>, transform_indices = @transform_6, window_bounds = array<i64: 1, 128>}, {pipeline_mode = #tpu.pipeline_mode<synchronous>, transform_indices = @transform_7, window_bounds = array<i64: 128, 128>}, {pipeline_mode = #tpu.pipeline_mode<synchronous>, transform_indices = @transform_8, window_bounds = array<i64: 1, 128>}, {pipeline_mode = #tpu.pipeline_mode<synchronous>, transform_indices = @transform_9, window_bounds = array<i64: 128, 4>}, {pipeline_mode = #tpu.pipeline_mode<synchronous>, transform_indices = @transform_10, window_bounds = array<i64: 1, 4>}, {transform_indices = @transform_11, window_bounds = array<i64: 8, 4>}]} {
    %c0 = arith.constant 0 : index
    %c0_0 = arith.constant 0 : index
    %0 = vector.load %arg1[%c0, %c0_0] : memref<8x16xf32, #tpu.memory_space<vmem>>, vector<8x16xf32>
    %c0_1 = arith.constant 0 : index
    %c0_2 = arith.constant 0 : index
    %1 = vector.load %arg3[%c0_1, %c0_2] : memref<2x16xf32, #tpu.memory_space<vmem>>, vector<1x16xf32>
    %2 = vector.broadcast %1 : vector<1x16xf32> to vector<8x16xf32>
    %3 = arith.mulf %0, %2 : vector<8x16xf32>
    %c1 = arith.constant 1 : index
    %c0_3 = arith.constant 0 : index
    %4 = vector.load %arg3[%c1, %c0_3] : memref<2x16xf32, #tpu.memory_space<vmem>>, vector<1x16xf32>
    %5 = vector.broadcast %4 : vector<1x16xf32> to vector<8x16xf32>
    %6 = arith.addf %3, %5 : vector<8x16xf32>
    %cst = arith.constant -2.000000e+02 : f32
    %cst_4 = arith.constant 2.000000e+02 : f32
    %7 = vector.broadcast %cst : f32 to vector<8x16xf32>
    %8 = arith.maximumf %7, %6 : vector<8x16xf32>
    %9 = vector.broadcast %cst_4 : f32 to vector<8x16xf32>
    %10 = arith.minimumf %9, %8 : vector<8x16xf32>
    %c0_5 = arith.constant 0 : index
    %c0_6 = arith.constant 0 : index
    %11 = vector.load %arg2[%c0_5, %c0_6] : memref<8x8xf32, #tpu.memory_space<vmem>>, vector<8x8xf32>
    %c0_7 = arith.constant 0 : index
    %c0_8 = arith.constant 0 : index
    %12 = vector.load %arg4[%c0_7, %c0_8] : memref<2x8xf32, #tpu.memory_space<vmem>>, vector<1x8xf32>
    %13 = vector.broadcast %12 : vector<1x8xf32> to vector<8x8xf32>
    %14 = arith.mulf %11, %13 : vector<8x8xf32>
    %c1_9 = arith.constant 1 : index
    %c0_10 = arith.constant 0 : index
    %15 = vector.load %arg4[%c1_9, %c0_10] : memref<2x8xf32, #tpu.memory_space<vmem>>, vector<1x8xf32>
    %16 = vector.broadcast %15 : vector<1x8xf32> to vector<8x8xf32>
    %17 = arith.addf %14, %16 : vector<8x8xf32>
    %cst_11 = arith.constant -2.000000e+02 : f32
    %cst_12 = arith.constant 2.000000e+02 : f32
    %18 = vector.broadcast %cst_11 : f32 to vector<8x8xf32>
    %19 = arith.maximumf %18, %17 : vector<8x8xf32>
    %20 = vector.broadcast %cst_12 : f32 to vector<8x8xf32>
    %21 = arith.minimumf %20, %19 : vector<8x8xf32>
    %c0_13 = arith.constant 0 : index
    %c0_14 = arith.constant 0 : index
    %22 = vector.load %arg5[%c0_13, %c0_14] : memref<16x128xf32, #tpu.memory_space<vmem>>, vector<16x128xf32>
    %cst_15 = arith.constant dense<0.000000e+00> : vector<8x128xf32>
    %23 = tpu.matmul %10, %22, %cst_15 {dimension_numbers = #tpu.dot_dimension_numbers<[1], [0], [0], [1], [0, 0, 1, 1], [], []>} : vector<8x16xf32>, vector<16x128xf32>, vector<8x128xf32> -> vector<8x128xf32>
    %c0_16 = arith.constant 0 : index
    %c0_17 = arith.constant 0 : index
    %24 = vector.load %arg6[%c0_16, %c0_17] : memref<8x128xf32, #tpu.memory_space<vmem>>, vector<8x128xf32>
    %cst_18 = arith.constant dense<0.000000e+00> : vector<8x128xf32>
    %25 = tpu.matmul %21, %24, %cst_18 {dimension_numbers = #tpu.dot_dimension_numbers<[1], [0], [0], [1], [0, 0, 1, 1], [], []>} : vector<8x8xf32>, vector<8x128xf32>, vector<8x128xf32> -> vector<8x128xf32>
    %26 = arith.addf %23, %25 : vector<8x128xf32>
    %c0_19 = arith.constant 0 : index
    %c0_20 = arith.constant 0 : index
    %27 = vector.load %arg7[%c0_19, %c0_20] : memref<1x128xf32, #tpu.memory_space<vmem>>, vector<1x128xf32>
    %28 = vector.broadcast %27 : vector<1x128xf32> to vector<8x128xf32>
    %29 = arith.addf %26, %28 : vector<8x128xf32>
    %cst_21 = arith.constant 0.000000e+00 : f32
    %30 = vector.broadcast %cst_21 : f32 to vector<8x128xf32>
    %31 = arith.maximumf %29, %30 : vector<8x128xf32>
    %c0_22 = arith.constant 0 : index
    %c0_23 = arith.constant 0 : index
    %32 = vector.load %arg8[%c0_22, %c0_23] : memref<128x128xf32, #tpu.memory_space<vmem>>, vector<128x128xf32>
    %cst_24 = arith.constant dense<0.000000e+00> : vector<8x128xf32>
    %33 = tpu.matmul %31, %32, %cst_24 {dimension_numbers = #tpu.dot_dimension_numbers<[1], [0], [0], [1], [0, 0, 1, 1], [], []>} : vector<8x128xf32>, vector<128x128xf32>, vector<8x128xf32> -> vector<8x128xf32>
    %c0_25 = arith.constant 0 : index
    %c0_26 = arith.constant 0 : index
    %34 = vector.load %arg9[%c0_25, %c0_26] : memref<1x128xf32, #tpu.memory_space<vmem>>, vector<1x128xf32>
    %35 = vector.broadcast %34 : vector<1x128xf32> to vector<8x128xf32>
    %36 = arith.addf %33, %35 : vector<8x128xf32>
    %cst_27 = arith.constant 0.000000e+00 : f32
    %37 = vector.broadcast %cst_27 : f32 to vector<8x128xf32>
    %38 = arith.maximumf %36, %37 : vector<8x128xf32>
    %c0_28 = arith.constant 0 : index
    %c0_29 = arith.constant 0 : index
    %39 = vector.load %arg10[%c0_28, %c0_29] : memref<128x4xf32, #tpu.memory_space<vmem>>, vector<128x4xf32>
    %cst_30 = arith.constant dense<0.000000e+00> : vector<8x4xf32>
    %40 = tpu.matmul %38, %39, %cst_30 {dimension_numbers = #tpu.dot_dimension_numbers<[1], [0], [0], [1], [0, 0, 1, 1], [], []>} : vector<8x128xf32>, vector<128x4xf32>, vector<8x4xf32> -> vector<8x4xf32>
    %c0_31 = arith.constant 0 : index
    %c0_32 = arith.constant 0 : index
    %41 = vector.load %arg11[%c0_31, %c0_32] : memref<1x4xf32, #tpu.memory_space<vmem>>, vector<1x4xf32>
    %42 = vector.broadcast %41 : vector<1x4xf32> to vector<8x4xf32>
    %43 = arith.addf %40, %42 : vector<8x4xf32>
    %cst_33 = arith.constant -1.000000e+00 : f32
    %cst_34 = arith.constant 1.000000e+00 : f32
    %44 = vector.broadcast %cst_33 : f32 to vector<8x4xf32>
    %45 = arith.maximumf %44, %43 : vector<8x4xf32>
    %46 = vector.broadcast %cst_34 : f32 to vector<8x4xf32>
    %47 = arith.minimumf %46, %45 : vector<8x4xf32>
    %c0_35 = arith.constant 0 : index
    %c0_36 = arith.constant 0 : index
    %48 = vector.load %arg12[%c0_35, %c0_36] : memref<8x4xf32, #tpu.memory_space<vmem>>, vector<8x4xf32>
    tpu.vector_store %arg12[%c0_35, %c0_36], %47 {strides = array<i32>} : memref<8x4xf32, #tpu.memory_space<vmem>>, vector<8x4xf32>,
    return
  }
  func.func @transform_0(%arg0: i32) -> (i32, i32) {
    %c0_i32 = arith.constant 0 : i32
    %c0_i32_0 = arith.constant 0 : i32
    return %arg0, %c0_i32 : i32, i32
  }
  func.func @transform_1(%arg0: i32) -> (i32, i32) {
    %c0_i32 = arith.constant 0 : i32
    %c0_i32_0 = arith.constant 0 : i32
    return %arg0, %c0_i32 : i32, i32
  }
  func.func @transform_2(%arg0: i32) -> (i32, i32) {
    %c0_i32 = arith.constant 0 : i32
    %c0_i32_0 = arith.constant 0 : i32
    %c0_i32_1 = arith.constant 0 : i32
    return %c0_i32, %c0_i32_0 : i32, i32
  }
  func.func @transform_3(%arg0: i32) -> (i32, i32) {
    %c0_i32 = arith.constant 0 : i32
    %c0_i32_0 = arith.constant 0 : i32
    %c0_i32_1 = arith.constant 0 : i32
    return %c0_i32, %c0_i32_0 : i32, i32
  }
  func.func @transform_4(%arg0: i32) -> (i32, i32) {
    %c0_i32 = arith.constant 0 : i32
    %c0_i32_0 = arith.constant 0 : i32
    %c0_i32_1 = arith.constant 0 : i32
    return %c0_i32, %c0_i32_0 : i32, i32
  }
  func.func @transform_5(%arg0: i32) -> (i32, i32) {
    %c0_i32 = arith.constant 0 : i32
    %c0_i32_0 = arith.constant 0 : i32
    %c0_i32_1 = arith.constant 0 : i32
    return %c0_i32, %c0_i32_0 : i32, i32
  }
  func.func @transform_6(%arg0: i32) -> (i32, i32) {
    %c0_i32 = arith.constant 0 : i32
    %c0_i32_0 = arith.constant 0 : i32
    %c0_i32_1 = arith.constant 0 : i32
    return %c0_i32, %c0_i32_0 : i32, i32
  }
  func.func @transform_7(%arg0: i32) -> (i32, i32) {
    %c0_i32 = arith.constant 0 : i32
    %c0_i32_0 = arith.constant 0 : i32
    %c0_i32_1 = arith.constant 0 : i32
    return %c0_i32, %c0_i32_0 : i32, i32
  }
  func.func @transform_8(%arg0: i32) -> (i32, i32) {
    %c0_i32 = arith.constant 0 : i32
    %c0_i32_0 = arith.constant 0 : i32
    %c0_i32_1 = arith.constant 0 : i32
    return %c0_i32, %c0_i32_0 : i32, i32
  }
  func.func @transform_9(%arg0: i32) -> (i32, i32) {
    %c0_i32 = arith.constant 0 : i32
    %c0_i32_0 = arith.constant 0 : i32
    %c0_i32_1 = arith.constant 0 : i32
    return %c0_i32, %c0_i32_0 : i32, i32
  }
  func.func @transform_10(%arg0: i32) -> (i32, i32) {
    %c0_i32 = arith.constant 0 : i32
    %c0_i32_0 = arith.constant 0 : i32
    %c0_i32_1 = arith.constant 0 : i32
    return %c0_i32, %c0_i32_0 : i32, i32
  }
  func.func @transform_11(%arg0: i32) -> (i32, i32) {
    %c0_i32 = arith.constant 0 : i32
    %c0_i32_0 = arith.constant 0 : i32
    return %arg0, %c0_i32 : i32, i32
  }
}

</mosaic_0001>

<bundles_post_ra>
// kernel: tpu_custom_call.1
= control target key start
LH: loop header
LB: loop body
LE: loop exit
PB: predicated region body
PF: predicated region fallthrough
CT: control target
= control target key end

     0   :  { %16 = vsyncpa [#allocation3], 0  ;;  %s925_s0 = inlined_call_operand.vmem [shape: f32[8,16], index: 0, kind: input, shape index: {}]   ;;  %s926_s1 = inlined_call_operand.hbm [shape: f32[8,8], index: 1, kind: input, shape index: {}]   ;;  %s927_s2 = inlined_call_operand.vmem [shape: f32[2,16], index: 2, kind: input, shape index: {}]   ;;  %s928_s3 = inlined_call_operand.vmem [shape: f32[2,8], index: 3, kind: input, shape index: {}]   ;;  %s929_s4 = inlined_call_operand.vmem [shape: f32[16,128], index: 4, kind: input, shape index: {}]   ;;  %s930_s5 = inlined_call_operand.hbm [shape: f32[8,128], index: 5, kind: input, shape index: {}]   ;;  %s931_s6 = inlined_call_operand.vmem [shape: f32[1,128], index: 6, kind: input, shape index: {}]   ;;  %s932_s7 = inlined_call_operand.vmem [shape: f32[128,128], index: 7, kind: input, shape index: {}]   ;;  %s933_s8 = inlined_call_operand.vmem [shape: f32[1,128], index: 8, kind: input, shape index: {}]   ;;  %s934_s9 = inlined_call_operand.vmem [shape: f32[128,4], index: 9, kind: input, shape index: {}]   ;;  %s935_s10 = inlined_call_operand.vmem [shape: f32[1,4], index: 10, kind: input, shape index: {}]   ;;  %s936_s11 = inlined_call_operand.vmem [shape: f32[8,4], index: 11, kind: output, shape index: {}]  }
   0x1   :  { %17 = vsyncpa [#allocation5], 0  ;;  %s686_s17 = smov [#allocation2]   ;;  %s687_s19 = smov [#allocation4]  }
   0x2   :  { %s26_s18 = sshll.u32 %s686_s17, 4  ;;  %s42_s20 = sshll.u32 %s687_s19, 4  ;;  %s27_s18 = int_to_ptr.vmem [resolvable:$true] %s26_s18  ;;  %s43_s20 = int_to_ptr.vmem [resolvable:$true] %s42_s20 }
   0x3   :  { %s638_s23 = scalar_lea.hbm %s926_s1, 128 }
   0x4   :  { %p639_p0 = scmp.ne.s32.totalorder %s926_s1, %s638_s23  ;;  %p642_p1 = scmp.lt.u32.totalorder %s638_s23, %s926_s1 }
   0x6   :  { %p644_p2 = pnand %p642_p1, %p639_p0 }
   0x8   :  { %647 = shalt.err (!%p644_p2)
}
   0x9   :  { %s648_s28 = scalar_lea.vmem %s27_s18, 128  ;;  %p653_p4 = scmp.lt.s32.totalorder %s27_s18, %s27_s18 }
   0xa   :  { %p649_p3 = scmp.ne.s32.totalorder %s27_s18, %s648_s28  ;;  %p654_p5 = scmp.lt.s32.totalorder %s648_s28, %s648_s28 }
   0xc   :  { %p655_p6 = por %p654_p5, %p653_p4 }
   0xe   :  { %p656_p7 = pnand %p655_p6, %p649_p3 }
  0x10   :  { %659 = shalt.err (!%p656_p7)
}
  0x11   :  { %29 = dma.hbm_to_vmem [thread:$0]  %s926_s1, 128, %s27_s18, [#allocation3]  }
  0x12   :  { %s660_s14 = scalar_lea.hbm %s930_s5, 128 }
  0x13   :  { %p661_p8 = scmp.ne.s32.totalorder %s930_s5, %s660_s14  ;;  %p664_p9 = scmp.lt.u32.totalorder %s660_s14, %s930_s5 }
  0x15   :  { %p666_p10 = pnand %p664_p9, %p661_p8 }
  0x17   :  { %669 = shalt.err (!%p666_p10)
}
  0x18   :  { %s670_s21 = scalar_lea.vmem %s43_s20, 128  ;;  %p675_p12 = scmp.lt.s32.totalorder %s43_s20, %s43_s20 }
  0x19   :  { %p671_p11 = scmp.ne.s32.totalorder %s43_s20, %s670_s21  ;;  %p676_p13 = scmp.lt.s32.totalorder %s670_s21, %s670_s21 }
  0x1b   :  { %p677_p0 = por %p676_p13, %p675_p12 }
  0x1d   :  { %p678_p1 = pnand %p677_p0, %p671_p11 }
  0x1f   :  { %681 = shalt.err (!%p678_p1)
}
  0x20   :  { %45 = dma.hbm_to_vmem [thread:$0]  %s930_s5, 128, %s43_s20, [#allocation5]  }
  0x21   :  { %682 = dma.done.wait [#allocation3], 128  }
  0x22   :  { %683 = vsyncadd [#allocation3], 4294967168 }
  0x23   :  { %684 = dma.done.wait [#allocation5], 128  }
  0x24   :  { %685 = vsyncadd [#allocation5], 4294967168  ;;  %v688_v0 = vmov 0.0|0.0   ;;  %v689_v1 = vmov 0.0   ;;  %vm690_vm0 = vmmov 0   ;;  %v92_v2 = vld [vmem:[%s929_s4] sm:$0xff] }
  0x25   :  { %582 = vmatprep.subr.bf16.mxu1 %v688_v0  ;;  %500 = vmatprep.subr.mxu0 %v689_v1  ;;  %v93_v3 = vld [vmem:[%s929_s4 + $0x8] sm:$0xff]  ;;  %v77_v6 = vld [vmem:[#allocation2] sm:$0xff]  ;;  %vm95_vm1 = vcmask 64512   ;;  %vm169_vm2 = vcmask 130048   ;;  %v254_v20 = vld [vmem:[%s932_s7 + $0x10] sm:$0xff]  ;;  %vm441_vm3 = vcmask 31744  }
  0x26   :  { %502 = vmatprep.mubr.msk.f32.mxu0 %vm690_vm0, %v689_v1  ;;  %509 = vmatprep.mubr.msk.f32.mxu1 %vm690_vm0, %v689_v1  ;;  %v94_v4 = vld [vmem:[#allocation4] sm:$0xff]  ;;  %v583_v5 = vpack.c.bf16 %v93_v3, %v92_v2  ;;  %v452_v7 = vld [vmem:[%s928_s3] ss:$0 sm:$0xff]  ;;  %v453_v8 = vld [vmem:[%s928_s3 + $0x1] ss:$0 sm:$0xff] }
  0x27   :  { %501 = vmatpush3.msra.mxu0 %v94_v4  ;;  %v83_v9 = vmul.f32 %v452_v7, %v77_v6  ;;  %v62_v10 = vld [vmem:[%s925_s0] sm:$0xff]  ;;  %v253_v15 = vld [vmem:[%s932_s7 + $0x8] sm:$0xff]  ;;  %v255_v21 = vld [vmem:[%s932_s7 + $0x18] sm:$0xff] }
  0x28   :  { %v449_v11 = vld [vmem:[%s927_s2] ss:$0 sm:$0xff]  ;;  %v450_v12 = vld [vmem:[%s927_s2 + $0x1] ss:$0 sm:$0xff]  ;;  %585 = vmatprep.subr.bf16.mxu0 %v688_v0  ;;  %584 = vmatpush3.bf16.msra.mxu1 %v583_v5  ;;  %v589_v23 = vpack.c.bf16 %v255_v21, %v254_v20  ;;  %v257_v25 = vld [vmem:[%s932_s7 + $0x28] sm:$0xff] }
  0x29   :  { %v68_v13 = vmul.f32 %v449_v11, %v62_v10  ;;  %v252_v14 = vld [vmem:[%s932_s7] sm:$0xff]  ;;  %v89_v16 = vadd.f32 %v453_v8, %v83_v9  ;;  %609 = vmatprep.subr.bf16.mxu1 %v688_v0  ;;  %v258_v27 = vld [vmem:[%s932_s7 + $0x30] sm:$0xff]  ;;  %v259_v28 = vld [vmem:[%s932_s7 + $0x38] sm:$0xff] }
  0x2a   :  { %v586_v18 = vpack.c.bf16 %v253_v15, %v252_v14  ;;  %v256_v24 = vld [vmem:[%s932_s7 + $0x20] sm:$0xff]  ;;  %v595_v29 = vpack.c.bf16 %v259_v28, %v258_v27  ;;  %v261_v31 = vld [vmem:[%s932_s7 + $0x48] sm:$0xff]  ;;  %v262_v33 = vld [vmem:[%s932_s7 + $0x50] sm:$0xff] }
  0x2b   :  { %v74_v17 = vadd.f32 %v450_v12, %v68_v13  ;;  %v454_v19 = vclamps-f32 %v89_v16, 200.0  ;;  %v592_v26 = vpack.c.bf16 %v257_v25, %v256_v24  ;;  %v260_v30 = vld [vmem:[%s932_s7 + $0x40] sm:$0xff]  ;;  %v263_v34 = vld [vmem:[%s932_s7 + $0x58] sm:$0xff]  ;;  %v265_v37 = vld [vmem:[%s932_s7 + $0x68] sm:$0xff] }
  0x2c   :  { %v598_v32 = vpack.c.bf16 %v261_v31, %v260_v30  ;;  %v601_v35 = vpack.c.bf16 %v263_v34, %v262_v33  ;;  %v264_v36 = vld [vmem:[%s932_s7 + $0x60] sm:$0xff]  ;;  %v266_v39 = vld [vmem:[%s932_s7 + $0x70] sm:$0xff]  ;;  %v267_v40 = vld [vmem:[%s932_s7 + $0x78] sm:$0xff] }
  0x2d   :  { %v451_v22 = vclamps-f32 %v74_v17, 200.0  ;;  %503 = vmatmul.mubr.msk.f32.vlgmr.msra.gmra.mrb[0].mxu0 %vm95_vm1, %v454_v19  ;;  %v604_v38 = vpack.c.bf16 %v265_v37, %v264_v36  ;;  %v607_v41 = vpack.c.bf16 %v267_v40, %v266_v39  ;;  %v346_v42 = vld [vmem:[%s934_s9] sm:$0xff]  ;;  %v347_v43 = vld [vmem:[%s934_s9 + $0x8] sm:$0xff]  ;;  %v348_v44 = vld [vmem:[%s934_s9 + $0x10] sm:$0xff] }
  0x2e   :  { %587 = vmatpush3.bf16.msra.mxu0 %v586_v18  ;;  %544 = vmatprep.mubr.msk.f32.mxu0 %vm690_vm0, %v689_v1  ;;  %v610_v45 = vpack.c.bf16 %v347_v43, %v346_v42  ;;  %v349_v46 = vld [vmem:[%s934_s9 + $0x18] sm:$0xff]  ;;  %v350_v48 = vld [vmem:[%s934_s9 + $0x20] sm:$0xff]  ;;  %v351_v49 = vld [vmem:[%s934_s9 + $0x28] sm:$0xff] }
  0x2f   :  { %510 = vmatmul.mubr.msk.f32.vlgmr.msra.gmra.mrb[0].mxu1 %vm169_vm2, %v451_v22  ;;  %588 = vmatprep.subr.bf16.mxu0 %v688_v0  ;;  %v613_v47 = vpack.c.bf16 %v349_v46, %v348_v44  ;;  %v616_v50 = vpack.c.bf16 %v351_v49, %v350_v48  ;;  %v352_v51 = vld [vmem:[%s934_s9 + $0x30] sm:$0xff]  ;;  %v353_v52 = vld [vmem:[%s934_s9 + $0x38] sm:$0xff]  ;;  %v354_v54 = vld [vmem:[%s934_s9 + $0x40] sm:$0xff] }
  0x30   :  { %579 = vmatprep.mubr.msk.f32.mxu1 %vm690_vm0, %v689_v1  ;;  %611 = vmatpush3.bf16.msra.mxu1 %v610_v45  ;;  %v619_v53 = vpack.c.bf16 %v353_v52, %v352_v51  ;;  %v355_v55 = vld [vmem:[%s934_s9 + $0x48] sm:$0xff]  ;;  %v356_v57 = vld [vmem:[%s934_s9 + $0x50] sm:$0xff]  ;;  %v357_v58 = vld [vmem:[%s934_s9 + $0x58] sm:$0xff] }
  0x31   :  { %612 = vmatprep.subr.bf16.mxu1 %v688_v0  ;;  %v622_v56 = vpack.c.bf16 %v355_v55, %v354_v54  ;;  %v625_v59 = vpack.c.bf16 %v357_v58, %v356_v57  ;;  %v358_v60 = vld [vmem:[%s934_s9 + $0x60] sm:$0xff]  ;;  %v359_v61 = vld [vmem:[%s934_s9 + $0x68] sm:$0xff]  ;;  %v360_v8 = vld [vmem:[%s934_s9 + $0x70] sm:$0xff] }
  0x32   :  { %590 = vmatpush3.bf16.msra.mxu0 %v589_v23  ;;  %v628_v62 = vpack.c.bf16 %v359_v61, %v358_v60  ;;  %v457_v2 = vld [vmem:[%s931_s6] ss:$0 sm:$0xff] }
  0x33   :  { %591 = vmatprep.subr.bf16.mxu0 %v688_v0  ;;  %v458_v10 = vld [vmem:[%s933_s8] ss:$0 sm:$0xff] }
  0x34   :  { %614 = vmatpush3.bf16.msra.mxu1 %v613_v47  ;;  %v459_v15 = vld [vmem:[%s935_s10] ss:$0 sm:$0xff] }
  0x35   :  { %615 = vmatprep.subr.bf16.mxu1 %v688_v0 }
  0x36   :  { %593 = vmatpush3.bf16.msra.mxu0 %v592_v26 }
  0x37   :  { %594 = vmatprep.subr.bf16.mxu0 %v688_v0 }
  0x38   :  { %617 = vmatpush3.bf16.msra.mxu1 %v616_v50 }
  0x39   :  { %618 = vmatprep.subr.bf16.mxu1 %v688_v0 }
  0x3a   :  { %596 = vmatpush3.bf16.msra.mxu0 %v595_v29 }
  0x3b   :  { %597 = vmatprep.subr.bf16.mxu0 %v688_v0 }
  0x3c   :  { %620 = vmatpush3.bf16.msra.mxu1 %v619_v53 }
  0x3d   :  { %621 = vmatprep.subr.bf16.mxu1 %v688_v0 }
  0x3e   :  { %599 = vmatpush3.bf16.msra.mxu0 %v598_v32 }
  0x3f   :  { %600 = vmatprep.subr.bf16.mxu0 %v688_v0 }
  0x40   :  { %623 = vmatpush3.bf16.msra.mxu1 %v622_v56 }
  0x41   :  { %624 = vmatprep.subr.bf16.mxu1 %v688_v0 }
  0x42   :  { %602 = vmatpush3.bf16.msra.mxu0 %v601_v35 }
  0x43   :  { %603 = vmatprep.subr.bf16.mxu0 %v688_v0 }
  0x44   :  { %626 = vmatpush3.bf16.msra.mxu1 %v625_v59 }
  0x45   :  { %627 = vmatprep.subr.bf16.mxu1 %v688_v0 }
  0x46   :  { %605 = vmatpush3.bf16.msra.mxu0 %v604_v38 }
  0x47   :  { %606 = vmatprep.subr.bf16.mxu0 %v688_v0 }
  0x48   :  { %629 = vmatpush3.bf16.msra.mxu1 %v628_v62 }
  0x49   :  { %630 = vmatprep.subr.bf16.mxu1 %v688_v0  ;;  %v361_v0 = vld [vmem:[%s934_s9 + $0x78] sm:$0xff] }
  0x4a   :  { %608 = vmatpush3.bf16.msra.mxu0 %v607_v41  ;;  %v631_v9 = vpack.c.bf16 %v361_v0, %v360_v8 }
  0x4c   :  { %632 = vmatpush3.bf16.msra.mxu1 %v631_v9 }
 0x100   :  { %v165_v63 = vpop.f32.mrb[0].mxu0 }
 0x101   :  { %v504_v3 = vpop.f32.mrb[1].mxu0 }
 0x102   :  { %v239_v1 = vpop.f32.mrb[0].mxu1 }
 0x103   :  { %v240_v4 = vadd.f32 %v239_v1, %v165_v63  ;;  %v511_v5 = vpop.f32.mrb[1].mxu1 }
 0x105   :  { %v250_v6 = vadd.f32 %v457_v2, %v240_v4 }
 0x107   :  { %v251_v7 = vmax.f32 %v250_v6, 0.0 }
 0x109   :  { %545 = vmatmul.mubr.f32.vlgmr.msra.gmra.mrb[2].mxu0 %v251_v7 }
 0x1dc   :  { %v341_v11 = vpop.f32.mrb[2].mxu0 }
 0x1dd   :  { %v342_v12 = vadd.f32 %v458_v10, %v341_v11  ;;  %v546_v13 = vpop.f32.mrb[3].mxu0 }
 0x1df   :  { %v345_v14 = vmax.f32 %v342_v12, 0.0 }
 0x1e1   :  { %580 = vmatmul.mubr.f32.vlgmr.msra.gmra.mrb[2].mxu1 %v345_v14 }
 0x2b4   :  { %v435_v16 = vpop.f32.mrb[2].mxu1 }
 0x2b5   :  { %v436_v17 = vadd.f32 %v459_v15, %v435_v16  ;;  %v581_v18 = vpop.f32.mrb[3].mxu1 }
 0x2b7   :  { %v460_v19 = vclamps-f32 %v436_v17, 1.0 }
 0x2b9   :  { %442 = vst.msk [vmem:[%s936_s11] sm:$0xff] %vm441_vm3, %v460_v19 }
 0x2ba   :  { %447 = vsyncpa [#allocation3], 1 }
 0x2bb   :  { %448 = vsyncpa [#allocation5], 1 }

</bundles_post_ra>
